<compile_context>
chip_gen: v7x
topology: tpu7x:2x2x1
jax: 0.10.0
libtpu: 0.0.40
codegen_flags: <defaults>
</compile_context>

<pallas_src>
import functools

import jax
import jax.numpy as jnp
from jax.experimental import pallas as pl
from jax.experimental.pallas import tpu as pltpu


def _ls_ce_row_kernel(pred_ref, tgt_ref, out_ref, *, class_num, lb_pos, lb_neg,
                      lb_ignore):
    x = pred_ref[...].astype(jnp.float32)                       # (tm, C)
    tgt = tgt_ref[...]                                          # (tm, 1) int32

    # Row-wise stable logsumexp: exp over C (unavoidable), 1 log per row.
    m = jnp.max(x, axis=-1, keepdims=True)                      # (tm, 1)
    e = jnp.exp(x - m)                                          # (tm, C)
    s = jnp.sum(e, axis=-1, keepdims=True)                      # (tm, 1)
    lse = m + jnp.log(s)                                        # (tm, 1)

    sum_x = jnp.sum(x, axis=-1, keepdims=True)                  # (tm, 1)

    # Target logit via one-hot select (ignored labels may be out of range ->
    # no match -> 0; the row is masked below anyway).
    cols = jax.lax.broadcasted_iota(jnp.int32, x.shape, 1)      # (tm, C)
    x_t = jnp.sum(jnp.where(cols == tgt, x, 0.0), axis=-1, keepdims=True)

    loss = -((lb_pos - lb_neg) * (x_t - lse)
             + lb_neg * (sum_x - jnp.float32(class_num) * lse))  # (tm, 1)

    valid = tgt != lb_ignore                                    # (tm, 1) bool
    out_ref[...] = jnp.where(valid, loss, 0.0).astype(out_ref.dtype)


def _choose_tile_m(m_rows, class_num, itemsize):
    """Largest row tile whose double-buffered pred block stays well in VMEM."""
    budget_per_buffer = 8 * 1024 * 1024          # safe on v5e/v6e and v7x
    t = budget_per_buffer // max(1, class_num * itemsize)
    t = max(8, min(int(t), 2048))
    t = (t // 8) * 8                             # sublane multiple
    m_rows_up = max(8, -(-m_rows // 8) * 8)
    return min(t, m_rows_up)


def label_smooth_softmax_ce(logits, label, *, lb_pos=0.9, lb_neg=0.005,
                            reduction="mean", lb_ignore=255, tile_m=None):
    """logits: (N, C, *spatial) float, label: (N, *spatial) int."""
    if logits.ndim < 2:
        raise ValueError("logits must be at least 2-D (N, C, ...)")
    lead = logits.shape[0]
    class_num = logits.shape[1]
    spatial = logits.shape[2:]

    # Layout plumbing: class dim -> lanes (last), rows = N * prod(spatial).
    x2d = jnp.moveaxis(logits, 1, -1).reshape(-1, class_num)
    lab = label.reshape(-1).astype(jnp.int32)
    m_rows = x2d.shape[0]

    if tile_m is None:
        tile_m = _choose_tile_m(m_rows, class_num, x2d.dtype.itemsize)
    tile_m = max(8, (int(tile_m) // 8) * 8)

    m_pad = pl.cdiv(m_rows, tile_m) * tile_m
    pad = m_pad - m_rows
    if pad:
        x2d = jnp.pad(x2d, ((0, pad), (0, 0)))
        lab = jnp.pad(lab, (0, pad), constant_values=lb_ignore)  # padded rows ignored
    lab2d = lab.reshape(m_pad, 1)

    kernel = functools.partial(
        _ls_ce_row_kernel,
        class_num=class_num,
        lb_pos=float(lb_pos),
        lb_neg=float(lb_neg),
        lb_ignore=int(lb_ignore),
    )

    per_row = pl.pallas_call(
        kernel,
        out_shape=jax.ShapeDtypeStruct((m_pad, 1), jnp.float32),
        grid_spec=pltpu.PrefetchScalarGridSpec(
            num_scalar_prefetch=0,
            grid=(m_pad // tile_m,),
            in_specs=[
                pl.BlockSpec((tile_m, class_num), lambda i: (i, 0)),
                pl.BlockSpec((tile_m, 1), lambda i: (i, 0)),
            ],
            out_specs=pl.BlockSpec((tile_m, 1), lambda i: (i, 0)),
        ),
        compiler_params=pltpu.CompilerParams(
            dimension_semantics=("parallel",),   # independent row tiles -> megacore OK
            vmem_limit_bytes=32 * 1024 * 1024,
        ),
    )(x2d, lab2d)

    per_row = per_row[:m_rows, 0]
    if reduction == "none":
        return per_row.reshape((lead,) + spatial)
    if reduction != "mean":
        raise ValueError(f"unsupported reduction: {reduction}")
    n_valid = jnp.sum((label.reshape(-1) != lb_ignore).astype(jnp.float32))
    return jnp.sum(per_row) / n_valid


def _reference(logits, label, lb_pos, lb_neg, reduction, lb_ignore):
    c = logits.shape[1]
    logs = jax.nn.log_softmax(logits.astype(jnp.float32), axis=1)
    ignore = label == lb_ignore
    n_valid = jnp.sum((~ignore).astype(jnp.float32))
    lab = jnp.where(ignore, 0, label)
    one_hot = jax.nn.one_hot(lab, c, axis=1, dtype=jnp.float32)
    sm = lb_pos * one_hot + lb_neg * (1.0 - one_hot)
    sm = jnp.where(jnp.expand_dims(ignore, 1), 0.0, sm)
    per = -jnp.sum(logs * sm, axis=1)
    if reduction == "mean":
        return jnp.sum(per) / n_valid
    return per


if __name__ == "__main__":
    key = jax.random.PRNGKey(0)
    k1, k2, k3 = jax.random.split(key, 3)

    N, C, H, W = 2, 8, 15, 17          # M = 510 rows (not a tile multiple)
    logits = jax.random.normal(k1, (N, C, H, W), dtype=jnp.float32)
    label = jax.random.randint(k2, (N, H, W), 0, C, dtype=jnp.int32)
    ign = jax.random.bernoulli(k3, 0.1, (N, H, W))
    label = jnp.where(ign, 255, label)  # sprinkle ignore_index pixels

    # Small explicit tile to exercise a multi-step grid + tail padding.
    loss_mean = label_smooth_softmax_ce(logits, label, reduction="mean", tile_m=128)
    loss_none = label_smooth_softmax_ce(logits, label, reduction="none", tile_m=128)
    # Default (large, VMEM-budgeted) tile path.
    loss_auto = label_smooth_softmax_ce(logits, label, reduction="mean")
    jax.block_until_ready((loss_mean, loss_none, loss_auto))

    ref_mean = _reference(logits, label, 0.9, 0.005, "mean", 255)
    ref_none = _reference(logits, label, 0.9, 0.005, "none", 255)

    assert jnp.allclose(loss_mean, ref_mean, rtol=1e-4, atol=1e-4), (loss_mean, ref_mean)
    assert jnp.allclose(loss_auto, ref_mean, rtol=1e-4, atol=1e-4), (loss_auto, ref_mean)
    assert jnp.allclose(loss_none, ref_none, rtol=1e-4, atol=1e-4)

    print("KERNEL_OK")
</pallas_src>

<mosaic_0001>
module attributes {stable_mosaic.version = 11 : i64} {
  func.func @_ls_ce_row_kernel(%arg0: i32, %arg1: memref<128x8xf32, #tpu.memory_space<vmem>>, %arg2: memref<128x1xi32, #tpu.memory_space<vmem>>, %arg3: memref<128x1xf32, #tpu.memory_space<vmem>>) attributes {dimension_semantics = [#tpu.dimension_semantics<parallel>], iteration_bounds = array<i64: 4>, scalar_prefetch = 0 : i64, scratch_operands = 0 : i64, tpu.core_type = #tpu.core_type<tc>, window_params = [{transform_indices = @transform_0, window_bounds = array<i64: 128, 8>}, {transform_indices = @transform_1, window_bounds = array<i64: 128, 1>}, {transform_indices = @transform_2, window_bounds = array<i64: 128, 1>}]} {
    %c0 = arith.constant 0 : index
    %c0_0 = arith.constant 0 : index
    %0 = vector.load %arg1[%c0, %c0_0] : memref<128x8xf32, #tpu.memory_space<vmem>>, vector<128x8xf32>
    %c0_1 = arith.constant 0 : index
    %c0_2 = arith.constant 0 : index
    %1 = vector.load %arg2[%c0_1, %c0_2] : memref<128x1xi32, #tpu.memory_space<vmem>>, vector<128x1xi32>
    %cst = arith.constant dense<0xFF800000> : vector<128xf32>
    %2 = vector.multi_reduction <maximumf>, %0, %cst [1] : vector<128x8xf32> to vector<128xf32>
    %3 = vector.shape_cast %2 : vector<128xf32> to vector<128x1xf32>
    %4 = vector.broadcast %3 : vector<128x1xf32> to vector<128x8xf32>
    %5 = arith.subf %0, %4 : vector<128x8xf32>
    %6 = math.exp %5 : vector<128x8xf32>
    %cst_3 = arith.constant dense<0.000000e+00> : vector<128xf32>
    %7 = vector.multi_reduction <add>, %6, %cst_3 [1] : vector<128x8xf32> to vector<128xf32>
    %8 = vector.shape_cast %7 : vector<128xf32> to vector<128x1xf32>
    %9 = math.log %8 : vector<128x1xf32>
    %10 = arith.addf %3, %9 : vector<128x1xf32>
    %cst_4 = arith.constant dense<0.000000e+00> : vector<128xf32>
    %11 = vector.multi_reduction <add>, %0, %cst_4 [1] : vector<128x8xf32> to vector<128xf32>
    %12 = vector.shape_cast %11 : vector<128xf32> to vector<128x1xf32>
    %13 = tpu.iota {dimensions = array<i32: 1>} : vector<128x8xi32>
    %14 = vector.broadcast %1 : vector<128x1xi32> to vector<128x8xi32>
    %15 = arith.cmpi eq, %13, %14 : vector<128x8xi32>
    %cst_5 = arith.constant 0.000000e+00 : f32
    %16 = vector.broadcast %cst_5 : f32 to vector<128x8xf32>
    %17 = arith.select %15, %0, %16 : vector<128x8xi1>, vector<128x8xf32>
    %cst_6 = arith.constant dense<0.000000e+00> : vector<128xf32>
    %18 = vector.multi_reduction <add>, %17, %cst_6 [1] : vector<128x8xf32> to vector<128xf32>
    %19 = vector.shape_cast %18 : vector<128xf32> to vector<128x1xf32>
    %20 = arith.subf %19, %10 : vector<128x1xf32>
    %cst_7 = arith.constant 0.89499998 : f32
    %21 = vector.broadcast %cst_7 : f32 to vector<128x1xf32>
    %22 = arith.mulf %21, %20 : vector<128x1xf32>
    %cst_8 = arith.constant 8.000000e+00 : f32
    %23 = vector.broadcast %cst_8 : f32 to vector<128x1xf32>
    %24 = arith.mulf %23, %10 : vector<128x1xf32>
    %25 = arith.subf %12, %24 : vector<128x1xf32>
    %cst_9 = arith.constant 5.000000e-03 : f32
    %26 = vector.broadcast %cst_9 : f32 to vector<128x1xf32>
    %27 = arith.mulf %26, %25 : vector<128x1xf32>
    %28 = arith.addf %22, %27 : vector<128x1xf32>
    %cst_10 = arith.constant 0.000000e+00 : f32
    %29 = vector.broadcast %cst_10 : f32 to vector<128x1xf32>
    %30 = arith.subf %29, %28 : vector<128x1xf32>
    %c255_i32 = arith.constant 255 : i32
    %31 = vector.broadcast %c255_i32 : i32 to vector<128x1xi32>
    %32 = arith.cmpi ne, %1, %31 : vector<128x1xi32>
    %cst_11 = arith.constant 0.000000e+00 : f32
    %33 = vector.broadcast %cst_11 : f32 to vector<128x1xf32>
    %34 = arith.select %32, %30, %33 : vector<128x1xi1>, vector<128x1xf32>
    %c0_12 = arith.constant 0 : index
    %c0_13 = arith.constant 0 : index
    %35 = vector.load %arg3[%c0_12, %c0_13] : memref<128x1xf32, #tpu.memory_space<vmem>>, vector<128x1xf32>
    tpu.vector_store %arg3[%c0_12, %c0_13], %34 {strides = array<i32>} : memref<128x1xf32, #tpu.memory_space<vmem>>, vector<128x1xf32>,
    return
  }
  func.func @transform_0(%arg0: i32) -> (i32, i32) {
    %c0_i32 = arith.constant 0 : i32
    %c0_i32_0 = arith.constant 0 : i32
    return %arg0, %c0_i32 : i32, i32
  }
  func.func @transform_1(%arg0: i32) -> (i32, i32) {
    %c0_i32 = arith.constant 0 : i32
    %c0_i32_0 = arith.constant 0 : i32
    return %arg0, %c0_i32 : i32, i32
  }
  func.func @transform_2(%arg0: i32) -> (i32, i32) {
    %c0_i32 = arith.constant 0 : i32
    %c0_i32_0 = arith.constant 0 : i32
    return %arg0, %c0_i32 : i32, i32
  }
}

</mosaic_0001>

<bundles_post_ra>
// kernel: tpu_custom_call.1
= control target key start
LH: loop header
LB: loop body
LE: loop exit
PB: predicated region body
PF: predicated region fallthrough
CT: control target
= control target key end

     0   :  { %s913_s9 = smov 0   ;;  %s1442_s0 = inlined_call_operand.vmem [shape: f32[512,8], index: 0, kind: input, shape index: {}]   ;;  %s1443_s1 = inlined_call_operand.vmem [shape: s32[512,1], index: 1, kind: input, shape index: {}]   ;;  %s1444_s2 = inlined_call_operand.vmem [shape: f32[512,1], index: 2, kind: output, shape index: {}]  }
   0x1 LB: > { %s801_s10 = sadd.s32 4294967295, %s895_s9   ;;  %p805_p0 = scmp.ge.s32.totalorder %s895_s9, 1  ;;  %s895_s9 = sphi %s913_s9, %s12_s9  }
   0x2   : > { %p124_p1 = scmp.lt.s32.totalorder %s895_s9, 5 }
   0x4   : > { %p125_p2 = pnand %p805_p0, %p124_p1 }
   0x6   : > { %128 = sbr.rel (%p125_p2) target bundleno = 412 (0x19c), region = 28 }
   0xd   : > { %s806_s11 = sshll.u32 %s801_s10, 4  ;;  %v897_v0 = vmov 0   ;;  %vm201_vm0 = vcmask 64512  }
   0xe   : > { %p152_p3 = scmp.lt.s32.totalorder %s806_s11, 63  ;;  %824 = vset.pattern.permute.xlu1 %v897_v0  ;;  %823 = vset.pattern.permute.xlu0 %v897_v0 }
  0x10   : > { %s1459_s11 = smov (!%p152_p3, %s806_s11), 63 }
  0x11   : > { %s921_s12 = sshll.u32 %s1459_s11, 3 }
  0x12   : > { %s927_s15 = scalar_lea.vmem %s1442_s0, %s921_s12  ;;  %s1025_s18 = scalar_lea.vmem %s1443_s1, %s921_s12 }
  0x13   : > { %v930_v1 = vld [vmem:[%s927_s15 + $0x10] sm:$0xff]  ;;  %v933_v2 = vld [vmem:[%s927_s15] sm:$0xff]  ;;  %v936_v3 = vld [vmem:[%s927_s15 + $0x18] sm:$0xff]  ;;  %s1323_s21 = scalar_lea.vmem %s1444_s2, %s921_s12 }
  0x14   : > { %v208_v4 = vsel %vm201_vm0, %v930_v1, -inf  ;;  %v202_v5 = vsel %vm201_vm0, %v933_v2, -inf  ;;  %v943_v6 = vld [vmem:[%s927_s15 + $0x8] sm:$0xff]  ;;  %v211_v7 = vsel %vm201_vm0, %v936_v3, -inf  ;;  %v953_v10 = vld [vmem:[%s927_s15 + $0x20] sm:$0xff]  ;;  %v960_v13 = vld [vmem:[%s927_s15 + $0x38] sm:$0xff] }
  0x15   : > { %209 = vmax.xlane.f32.xlu1 %v208_v4  ;;  %203 = vmax.xlane.f32.xlu0 %v202_v5  ;;  %v205_v8 = vsel %vm201_vm0, %v943_v6, -inf  ;;  %v950_v9 = vld [vmem:[%s927_s15 + $0x28] sm:$0xff]  ;;  %v214_v12 = vsel %vm201_vm0, %v953_v10, -inf  ;;  %v963_v14 = vld [vmem:[%s927_s15 + $0x30] sm:$0xff]  ;;  %v223_v15 = vsel %vm201_vm0, %v960_v13, -inf  ;;  %v973_v18 = vld [vmem:[%s927_s15 + $0x40] sm:$0xff] }
  0x16   : > { %v217_v11 = vsel %vm201_vm0, %v950_v9, -inf  ;;  %v220_v16 = vsel %vm201_vm0, %v963_v14, -inf  ;;  %v970_v17 = vld [vmem:[%s927_s15 + $0x48] sm:$0xff]  ;;  %v226_v20 = vsel %vm201_vm0, %v973_v18, -inf  ;;  %v980_v21 = vld [vmem:[%s927_s15 + $0x58] sm:$0xff]  ;;  %v983_v22 = vld [vmem:[%s927_s15 + $0x50] sm:$0xff] }
  0x17   : > { %v229_v19 = vsel %vm201_vm0, %v970_v17, -inf  ;;  %v235_v23 = vsel %vm201_vm0, %v980_v21, -inf  ;;  %v232_v24 = vsel %vm201_vm0, %v983_v22, -inf  ;;  %v990_v25 = vld [vmem:[%s927_s15 + $0x68] sm:$0xff]  ;;  %v993_v26 = vld [vmem:[%s927_s15 + $0x60] sm:$0xff]  ;;  %v1000_v29 = vld [vmem:[%s927_s15 + $0x78] sm:$0xff] }
  0x18   : > { %v241_v27 = vsel %vm201_vm0, %v990_v25, -inf  ;;  %v238_v28 = vsel %vm201_vm0, %v993_v26, -inf  ;;  %v1003_v30 = vld [vmem:[%s927_s15 + $0x70] sm:$0xff]  ;;  %v247_v31 = vsel %vm201_vm0, %v1000_v29, -inf  ;;  %v397_v33 = vsel %vm201_vm0, %v943_v6, 0.0  ;;  %v1028_v39 = vld [vmem:[%s1025_s18 + $0x8] sm:$0xff] }
  0x19   : > { %212 = vmax.xlane.f32.xlu1 %v211_v7  ;;  %206 = vmax.xlane.f32.xlu0 %v205_v8  ;;  %v244_v32 = vsel %vm201_vm0, %v1003_v30, -inf  ;;  %v394_v34 = vsel %vm201_vm0, %v933_v2, 0.0  ;;  %v403_v35 = vsel %vm201_vm0, %v936_v3, 0.0  ;;  %v400_v36 = vsel %vm201_vm0, %v930_v1, 0.0  ;;  %v1032_v40 = vld [vmem:[%s1025_s18 + $0x10] sm:$0xff]  ;;  %v1035_v41 = vld [vmem:[%s1025_s18] sm:$0xff] }
  0x1a   : > { %v409_v37 = vsel %vm201_vm0, %v950_v9, 0.0  ;;  %v406_v38 = vsel %vm201_vm0, %v953_v10, 0.0  ;;  %v1040_v42 = vld [vmem:[%s1025_s18 + $0x18] sm:$0xff]  ;;  %v1043_v43 = vld [vmem:[%s1025_s18 + $0x48] sm:$0xff]  ;;  %v1048_v44 = vld [vmem:[%s1025_s18 + $0x20] sm:$0xff]  ;;  %v415_v55 = vsel %vm201_vm0, %v960_v13, 0.0 }
  0x1b   : > { %v1051_v45 = vld [vmem:[%s1025_s18 + $0x58] sm:$0xff]  ;;  %v1056_v46 = vld [vmem:[%s1025_s18 + $0x28] sm:$0xff]  ;;  %v1064_v48 = vld [vmem:[%s1025_s18 + $0x30] sm:$0xff]  ;;  %v418_v56 = vsel %vm201_vm0, %v973_v18, 0.0  ;;  %v412_v57 = vsel %vm201_vm0, %v963_v14, 0.0 }
  0x1c   : > { %1450 = vst [vmem:[#allocation2_spill] sm:$0xff] %v1051_v45  ;;  %v1059_v47 = vld [vmem:[%s1025_s18 + $0x68] sm:$0xff]  ;;  %v1067_v49 = vld [vmem:[%s1025_s18 + $0x78] sm:$0xff]  ;;  %v1076_v51 = vld [vmem:[%s1025_s18 + $0x40] sm:$0xff] }
  0x1d   : > { %218 = vmax.xlane.f32.xlu1 %v217_v11  ;;  %215 = vmax.xlane.f32.xlu0 %v214_v12  ;;  %1451 = vst [vmem:[#allocation3_spill] sm:$0xff] %v1059_v47  ;;  %1452 = vst [vmem:[#allocation4_spill] sm:$0xff] %v1067_v49  ;;  %v1072_v50 = vld [vmem:[%s1025_s18 + $0x38] sm:$0xff]  ;;  %v1080_v52 = vld [vmem:[%s1025_s18 + $0x50] sm:$0xff] }
  0x1e   : > { %v1084_v53 = vld [vmem:[%s1025_s18 + $0x60] sm:$0xff]  ;;  %v1088_v54 = vld [vmem:[%s1025_s18 + $0x70] sm:$0xff] }
  0x1f   : > { %1453 = vst [vmem:[#allocation5_spill] sm:$0xff] %v1088_v54 }
  0x21   : > { %224 = vmax.xlane.f32.xlu1 %v223_v15  ;;  %221 = vmax.xlane.f32.xlu0 %v220_v16 }
  0x25   : > { %230 = vmax.xlane.f32.xlu1 %v229_v19  ;;  %227 = vmax.xlane.f32.xlu0 %v226_v20 }
  0x29   : > { %236 = vmax.xlane.f32.xlu1 %v235_v23  ;;  %233 = vmax.xlane.f32.xlu0 %v232_v24 }
  0x2d   : > { %242 = vmax.xlane.f32.xlu1 %v241_v27  ;;  %239 = vmax.xlane.f32.xlu0 %v238_v28 }
  0x31   : > { %248 = vmax.xlane.f32.xlu1 %v247_v31  ;;  %245 = vmax.xlane.f32.xlu0 %v244_v32 }
  0x35   : > { %398 = vadd.xlane.f32.xlu1 %v397_v33  ;;  %395 = vadd.xlane.f32.xlu0 %v394_v34 }
  0x39   : > { %404 = vadd.xlane.f32.xlu1 %v403_v35  ;;  %401 = vadd.xlane.f32.xlu0 %v400_v36 }
  0x3d   : > { %410 = vadd.xlane.f32.xlu1 %v409_v37  ;;  %407 = vadd.xlane.f32.xlu0 %v406_v38 }
  0x4e   : > { %448 = vperm.xlu1 %824, %v1028_v39  }
  0x52   : > { %451 = vperm.xlu1 %824, %v1032_v40  }
  0x53   : > { %445 = vperm.xlu0 %823, %v1035_v41  }
  0x56   : > { %454 = vperm.xlu1 %824, %v1040_v42  }
  0x57   : > { %472 = vperm.xlu0 %823, %v1043_v43  }
  0x5a   : > { %457 = vperm.xlu1 %824, %v1048_v44  }
  0x5b   : > { %478 = vperm.xlu0 %823, %v1051_v45  }
  0x5e   : > { %460 = vperm.xlu1 %824, %v1056_v46  }
  0x5f   : > { %484 = vperm.xlu0 %823, %v1059_v47   ;;  %v424_v47 = vsel %vm201_vm0, %v983_v22, 0.0 }
  0x62   : > { %463 = vperm.xlu1 %824, %v1064_v48  }
  0x63   : > { %490 = vperm.xlu0 %823, %v1067_v49  }
  0x66   : > { %466 = vperm.xlu1 %824, %v1072_v50  }
  0x6a   : > { %469 = vperm.xlu1 %824, %v1076_v51  }
  0x6e   : > { %475 = vperm.xlu1 %824, %v1080_v52  }
  0x72   : > { %481 = vperm.xlu1 %824, %v1084_v53  }
  0x76   : > { %487 = vperm.xlu1 %824, %v1088_v54  }
  0x82   : > { %416 = vadd.xlane.f32.xlu0 %v415_v55 }
  0x86   : > { %419 = vadd.xlane.f32.xlu0 %v418_v56 }
  0x9a   : > { %413 = vadd.xlane.f32.xlu1 %v412_v57 }
  0xa2   : > { %v1097_v58 = vpop.xlane.xlu1 %209  ;;  %v1099_v59 = vpop.xlane.xlu0 %203 }
  0xa3   : > { %v252_v60 = vsub.f32 %v930_v1, %v1097_v58  ;;  %v250_v61 = vsub.f32 %v933_v2, %v1099_v59 }
  0xa5   : > { %v270_v62 = vmul.f32 1.442695, %v252_v60  ;;  %v266_v63 = vmul.f32 1.442695, %v250_v61 }
  0xa6   : > { %v1105_v0 = vpop.xlane.xlu1 %212  ;;  %v1107_v4 = vpop.xlane.xlu0 %206 }
  0xa7   : > { %825 = vpow2.f32 %v270_v62  ;;  %v253_v5 = vsub.f32 %v936_v3, %v1105_v0  ;;  %v251_v7 = vsub.f32 %v943_v6, %v1107_v4 }
  0xa8   : > { %827 = vpow2.f32 %v266_v63 }
  0xa9   : > { %v272_v8 = vmul.f32 1.442695, %v253_v5  ;;  %v268_v11 = vmul.f32 1.442695, %v251_v7 }
  0xaa   : > { %v1113_v12 = vpop.xlane.xlu1 %218  ;;  %v1115_v15 = vpop.xlane.xlu0 %215 }
  0xab   : > { %829 = vpow2.f32 %v272_v8  ;;  %v255_v16 = vsub.f32 %v950_v9, %v1113_v12  ;;  %v254_v19 = vsub.f32 %v953_v10, %v1115_v15 }
  0xac   : > { %831 = vpow2.f32 %v268_v11 }
  0xad   : > { %v276_v20 = vmul.f32 1.442695, %v255_v16  ;;  %v274_v23 = vmul.f32 1.442695, %v254_v19 }
  0xae   : > { %v1121_v24 = vpop.xlane.xlu1 %224  ;;  %v1123_v27 = vpop.xlane.xlu0 %221 }
  0xaf   : > { %833 = vpow2.f32 %v276_v20  ;;  %v257_v28 = vsub.f32 %v960_v13, %v1121_v24  ;;  %v256_v31 = vsub.f32 %v963_v14, %v1123_v27 }
  0xb0   : > { %835 = vpow2.f32 %v274_v23 }
  0xb1   : > { %v826_v32 = vpop.eup %825  ;;  %v280_v33 = vmul.f32 1.442695, %v257_v28  ;;  %v278_v34 = vmul.f32 1.442695, %v256_v31 }
  0xb2   : > { %v828_v35 = vpop.eup %827  ;;  %v1129_v36 = vpop.xlane.xlu1 %230  ;;  %v304_v62 = vsel %vm201_vm0, %v826_v32, 0.0 }
  0xb3   : > { %v1131_v37 = vpop.xlane.xlu0 %227  ;;  %837 = vpow2.f32 %v280_v33  ;;  %v259_v38 = vsub.f32 %v970_v17, %v1129_v36  ;;  %v298_v56 = vsel %vm201_vm0, %v828_v35, 0.0 }
  0xb4   : > { %v258_v55 = vsub.f32 %v973_v18, %v1131_v37  ;;  %839 = vpow2.f32 %v278_v34  ;;  %299 = vadd.xlane.f32.xlu0 %v298_v56 }
  0xb5   : > { %v830_v57 = vpop.eup %829  ;;  %v284_v60 = vmul.f32 1.442695, %v259_v38 }
  0xb6   : > { %v282_v61 = vmul.f32 1.442695, %v258_v55  ;;  %v832_v63 = vpop.eup %831  ;;  %v1139_v5 = vpop.xlane.xlu1 %236  ;;  %v307_v28 = vsel %vm201_vm0, %v830_v57, 0.0 }
  0xb7   : > { %v1141_v7 = vpop.xlane.xlu0 %233  ;;  %841 = vpow2.f32 %v284_v60  ;;  %v261_v8 = vsub.f32 %v980_v21, %v1139_v5  ;;  %v301_v16 = vsel %vm201_vm0, %v832_v63, 0.0 }
  0xb8   : > { %v260_v11 = vsub.f32 %v983_v22, %v1141_v7  ;;  %843 = vpow2.f32 %v282_v61  ;;  %305 = vadd.xlane.f32.xlu0 %v304_v62  ;;  %302 = vadd.xlane.f32.xlu1 %v301_v16 }
  0xb9   : > { %v834_v19 = vpop.eup %833  ;;  %v288_v20 = vmul.f32 1.442695, %v261_v8 }
  0xba   : > { %v286_v23 = vmul.f32 1.442695, %v260_v11  ;;  %v836_v31 = vpop.eup %835  ;;  %v1149_v32 = vpop.xlane.xlu1 %242  ;;  %v313_v60 = vsel %vm201_vm0, %v834_v19, 0.0 }
  0xbb   : > { %v1151_v33 = vpop.xlane.xlu0 %239  ;;  %845 = vpow2.f32 %v288_v20  ;;  %v263_v34 = vsub.f32 %v990_v25, %v1149_v32  ;;  %v310_v38 = vsel %vm201_vm0, %v836_v31, 0.0 }
  0xbc   : > { %v262_v35 = vsub.f32 %v993_v26, %v1151_v33  ;;  %847 = vpow2.f32 %v286_v23  ;;  %308 = vadd.xlane.f32.xlu1 %v307_v28  ;;  %311 = vadd.xlane.f32.xlu0 %v310_v38 }
  0xbd   : > { %v838_v55 = vpop.eup %837  ;;  %v292_v56 = vmul.f32 1.442695, %v263_v34 }
  0xbe   : > { %v290_v57 = vmul.f32 1.442695, %v262_v35  ;;  %v840_v61 = vpop.eup %839  ;;  %v1159_v62 = vpop.xlane.xlu1 %248  ;;  %v319_v28 = vsel %vm201_vm0, %v838_v55, 0.0 }
  0xbf   : > { %v1161_v63 = vpop.xlane.xlu0 %245  ;;  %849 = vpow2.f32 %v292_v56  ;;  %v265_v8 = vsub.f32 %v1000_v29, %v1159_v62  ;;  %v316_v16 = vsel %vm201_vm0, %v840_v61, 0.0 }
  0xc0   : > { %v264_v11 = vsub.f32 %v1003_v30, %v1161_v63  ;;  %851 = vpow2.f32 %v290_v57  ;;  %314 = vadd.xlane.f32.xlu1 %v313_v60  ;;  %317 = vadd.xlane.f32.xlu0 %v316_v16 }
  0xc1   : > { %v842_v20 = vpop.eup %841  ;;  %v296_v23 = vmul.f32 1.442695, %v265_v8 }
  0xc2   : > { %v294_v19 = vmul.f32 1.442695, %v264_v11  ;;  %v844_v31 = vpop.eup %843  ;;  %v1169_v34 = vpop.xlane.xlu1 %398  ;;  %v325_v57 = vsel %vm201_vm0, %v842_v20, 0.0 }
  0xc3   : > { %853 = vpow2.f32 %v296_v23  ;;  %v322_v35 = vsel %vm201_vm0, %v844_v31, 0.0  ;;  %v1172_v38 = vpop.xlane.xlu0 %395 }
  0xc4   : > { %855 = vpow2.f32 %v294_v19  ;;  %320 = vadd.xlane.f32.xlu1 %v319_v28  ;;  %323 = vadd.xlane.f32.xlu0 %v322_v35 }
  0xc5   : > { %v846_v56 = vpop.eup %845 }
  0xc6   : > { %v848_v60 = vpop.eup %847  ;;  %v1175_v61 = vpop.xlane.xlu1 %404  ;;  %v331_v11 = vsel %vm201_vm0, %v846_v56, 0.0  ;;  %v442_v56 = vlaneseq }
  0xc7   : > { %v328_v8 = vsel %vm201_vm0, %v848_v60, 0.0  ;;  %v1181_v19 = vpop.xlane.xlu0 %401 }
  0xc8   : > { %326 = vadd.xlane.f32.xlu1 %v325_v57  ;;  %329 = vadd.xlane.f32.xlu0 %v328_v8 }
  0xc9   : > { %v850_v55 = vpop.eup %849 }
  0xca   : > { %v852_v16 = vpop.eup %851  ;;  %v1179_v23 = vpop.xlane.xlu1 %410  ;;  %v337_v31 = vsel %vm201_vm0, %v850_v55, 0.0  ;;  %v421_v55 = vsel %vm201_vm0, %v970_v17, 0.0 }
  0xcb   : > { %v334_v28 = vsel %vm201_vm0, %v852_v16, 0.0  ;;  %v1186_v60 = vpop.xlane.xlu0 %407 }
  0xcc   : > { %332 = vadd.xlane.f32.xlu1 %v331_v11  ;;  %335 = vadd.xlane.f32.xlu0 %v334_v28  ;;  %v1191_v11 = vand.u32 127, %v442_v56  ;;  %v430_v28 = vsel %vm201_vm0, %v993_v26, 0.0 }
  0xcd   : > { %v854_v20 = vpop.eup %853 }
  0xce   : > { %v856_v35 = vpop.eup %855  ;;  %v449_v49 = vpop.permute.xlu1 %448  ;;  %v343_v8 = vsel %vm201_vm0, %v854_v20, 0.0  ;;  %v427_v20 = vsel %vm201_vm0, %v980_v21, 0.0 }
  0xcf   : > { %v340_v57 = vsel %vm201_vm0, %v856_v35, 0.0  ;;  %vm493_vm3 = vcmp.eq.s32.totalorder %v1191_v11, %v449_v49 }
  0xd0   : > { %338 = vadd.xlane.f32.xlu1 %v337_v31  ;;  %341 = vadd.xlane.f32.xlu0 %v340_v57 }
  0xd2   : > { %v452_v16 = vpop.permute.xlu1 %451  ;;  %v446_v31 = vpop.permute.xlu0 %445 }
  0xd3   : > { %vm492_vm1 = vcmp.eq.s32.totalorder %v1191_v11, %v446_v31  ;;  %vm494_vm2 = vcmp.eq.s32.totalorder %v1191_v11, %v452_v16 }
  0xd4   : > { %344 = vadd.xlane.f32.xlu1 %v343_v8  ;;  %425 = vadd.xlane.f32.xlu0 %v424_v47  ;;  %v436_v47 = vsel %vm201_vm0, %v1003_v30, 0.0  ;;  %v508_v56 = vsel %vm492_vm1, %v933_v2, 0.0  ;;  %v433_v8 = vsel %vm201_vm0, %v990_v25, 0.0  ;;  %v439_v2 = vsel %vm201_vm0, %v1000_v29, 0.0 }
  0xd5   : > { %v524_v31 = vsel %vm201_vm0, %v508_v56, 0.0 }
  0xd6   : > { %v455_v35 = vpop.permute.xlu1 %454 }
  0xd7   : > { %vm495_vm5 = vcmp.eq.s32.totalorder %v1191_v11, %v455_v35 }
  0xd8   : > { %422 = vadd.xlane.f32.xlu1 %v421_v55  ;;  %431 = vadd.xlane.f32.xlu0 %v430_v28  ;;  %v510_v28 = vsel %vm494_vm2, %v930_v1, 0.0  ;;  %vm686_vm2 = vcmp.ne.s32.totalorder %v1032_v40, 255 }
  0xd9   : > { %v530_v16 = vsel %vm201_vm0, %v510_v28, 0.0 }
  0xda   : > { %v458_v57 = vpop.permute.xlu1 %457 }
  0xdb   : > { %vm496_vm4 = vcmp.eq.s32.totalorder %v1191_v11, %v458_v57 }
  0xdc   : > { %428 = vadd.xlane.f32.xlu1 %v427_v20  ;;  %437 = vadd.xlane.f32.xlu0 %v436_v47  ;;  %v509_v47 = vsel %vm493_vm3, %v943_v6, 0.0  ;;  %v512_v56 = vsel %vm496_vm4, %v953_v10, 0.0  ;;  %vm716_vm3 = vcmask 7168   ;;  %vm685_vm4 = vcmp.ne.s32.totalorder %v1028_v39, 255 }
  0xdd   : > { %v527_v49 = vsel %vm201_vm0, %v509_v47, 0.0  ;;  %v536_v57 = vsel %vm201_vm0, %v512_v56, 0.0 }
  0xde   : > { %v461_v55 = vpop.permute.xlu1 %460 }
  0xdf   : > { %vm497_vm7 = vcmp.eq.s32.totalorder %v1191_v11, %v461_v55 }
  0xe0   : > { %434 = vadd.xlane.f32.xlu1 %v433_v8  ;;  %525 = vadd.xlane.f32.xlu0 %v524_v31  ;;  %v473_v8 = vpop.permute.xlu0 %472  ;;  %v511_v31 = vsel %vm495_vm5, %v936_v3, 0.0  ;;  %vm688_vm5 = vcmp.ne.s32.totalorder %v1048_v44, 255 }
  0xe1   : > { %v533_v10 = vsel %vm201_vm0, %v511_v31, 0.0  ;;  %vm501_vm11 = vcmp.eq.s32.totalorder %v1191_v11, %v473_v8 }
  0xe2   : > { %v464_v20 = vpop.permute.xlu1 %463  ;;  %v517_v31 = vsel %vm501_vm11, %v970_v17, 0.0  ;;  %vm694_vm11 = vcmp.ne.s32.totalorder %v1080_v52, 255 }
  0xe3   : > { %vm498_vm6 = vcmp.eq.s32.totalorder %v1191_v11, %v464_v20  ;;  %v551_v8 = vsel %vm201_vm0, %v517_v31, 0.0 }
  0xe4   : > { %440 = vadd.xlane.f32.xlu1 %v439_v2  ;;  %531 = vadd.xlane.f32.xlu0 %v530_v16  ;;  %v514_v28 = vsel %vm498_vm6, %v963_v14, 0.0  ;;  %v513_v2 = vsel %vm497_vm7, %v950_v9, 0.0  ;;  %v479_v14 = vpop.permute.xlu0 %478  ;;  %vm687_vm6 = vcmp.ne.s32.totalorder %v1040_v42, 255  ;;  %vm690_vm7 = vcmp.ne.s32.totalorder %v1064_v48, 255 }
  0xe5   : > { %v542_v35 = vsel %vm201_vm0, %v514_v28, 0.0  ;;  %v539_v55 = vsel %vm201_vm0, %v513_v2, 0.0  ;;  %vm503_vm13 = vcmp.eq.s32.totalorder %v1191_v11, %v479_v14 }
  0xe6   : > { %v467_v1 = vpop.permute.xlu1 %466 }
  0xe7   : > { %vm499_vm9 = vcmp.eq.s32.totalorder %v1191_v11, %v467_v1 }
  0xe8   : > { %528 = vadd.xlane.f32.xlu1 %v527_v49  ;;  %537 = vadd.xlane.f32.xlu0 %v536_v57  ;;  %v515_v47 = vsel %vm499_vm9, %v960_v13, 0.0  ;;  %v485_v49 = vpop.permute.xlu0 %484  ;;  %vm692_vm9 = vcmp.ne.s32.totalorder %v1076_v51, 255 }
  0xe9   : > { %v545_v1 = vsel %vm201_vm0, %v515_v47, 0.0  ;;  %vm505_vm15 = vcmp.eq.s32.totalorder %v1191_v11, %v485_v49 }
  0xea   : > { %v470_v6 = vpop.permute.xlu1 %469 }
  0xeb   : > { %vm500_vm8 = vcmp.eq.s32.totalorder %v1191_v11, %v470_v6  ;;  %v519_v6 = vsel %vm503_vm13, %v980_v21, 0.0  ;;  %vm696_vm13 = vcmp.ne.s32.totalorder %v1084_v53, 255 }
  0xec   : > { %534 = vadd.xlane.f32.xlu1 %v533_v10  ;;  %543 = vadd.xlane.f32.xlu0 %v542_v35  ;;  %v516_v20 = vsel %vm500_vm8, %v973_v18, 0.0  ;;  %v491_v17 = vpop.permute.xlu0 %490  ;;  %v557_v10 = vsel %vm201_vm0, %v519_v6, 0.0  ;;  %v521_v35 = vsel %vm505_vm15, %v990_v25, 0.0  ;;  %vm689_vm8 = vcmp.ne.s32.totalorder %v1056_v46, 255 }
  0xed   : > { %v548_v3 = vsel %vm201_vm0, %v516_v20, 0.0  ;;  %vm507_vm1 = vcmp.eq.s32.totalorder %v1191_v11, %v491_v17  ;;  %v563_v2 = vsel %vm201_vm0, %v521_v35, 0.0 }
  0xee   : > { %v476_v16 = vpop.permute.xlu1 %475 }
  0xef   : > { %vm502_vm10 = vcmp.eq.s32.totalorder %v1191_v11, %v476_v16 }
  0xf0   : > { %540 = vadd.xlane.f32.xlu1 %v539_v55  ;;  %549 = vadd.xlane.f32.xlu0 %v548_v3  ;;  %v518_v56 = vsel %vm502_vm10, %v983_v22, 0.0  ;;  %vm691_vm10 = vcmp.ne.s32.totalorder %v1072_v50, 255 }
  0xf1   : > { %v554_v9 = vsel %vm201_vm0, %v518_v56, 0.0 }
  0xf2   : > { %v482_v18 = vpop.permute.xlu1 %481 }
  0xf3   : > { %vm504_vm12 = vcmp.eq.s32.totalorder %v1191_v11, %v482_v18 }
  0xf4   : > { %546 = vadd.xlane.f32.xlu1 %v545_v1  ;;  %555 = vadd.xlane.f32.xlu0 %v554_v9  ;;  %v520_v57 = vsel %vm504_vm12, %v993_v26, 0.0  ;;  %vm693_vm12 = vcmp.ne.s32.totalorder %v1043_v43, 255 }
  0xf5   : > { %v560_v13 = vsel %vm201_vm0, %v520_v57, 0.0 }
  0xf6   : > { %v488_v22 = vpop.permute.xlu1 %487 }
  0xf7   : > { %vm506_vm14 = vcmp.eq.s32.totalorder %v1191_v11, %v488_v22 }
  0xf8   : > { %561 = vadd.xlane.f32.xlu0 %v560_v13  ;;  %552 = vadd.xlane.f32.xlu1 %v551_v8  ;;  %v522_v28 = vsel %vm506_vm14, %v1003_v30, 0.0  ;;  %v523_v30 = vsel %vm507_vm1, %v1000_v29, 0.0 }
  0xf9   : > { %v566_v26 = vsel %vm201_vm0, %v522_v28, 0.0  ;;  %v569_v21 = vsel %vm201_vm0, %v523_v30, 0.0  ;;  %vm684_vm0 = vcmp.ne.s32.totalorder %v1035_v41, 255 }
  0xfc   : > { %567 = vadd.xlane.f32.xlu0 %v566_v26  ;;  %558 = vadd.xlane.f32.xlu1 %v557_v10 }
 0x100   : > { %564 = vadd.xlane.f32.xlu1 %v563_v2 }
 0x104   : > { %570 = vadd.xlane.f32.xlu1 %v569_v21 }
 0x10f   : > { %v1253_v20 = vpop.xlane.xlu0 %416 }
 0x113   : > { %v1255_v3 = vpop.xlane.xlu0 %419 }
 0x127   : > { %v1257_v14 = vpop.xlane.xlu1 %413 }
 0x141   : > { %v300_v16 = vpop.xlane.xlu0 %299 }
 0x142   : > { %857 = vlog2.f32 %v300_v16 }
 0x145   : > { %v303_v55 = vpop.xlane.xlu1 %302  ;;  %v306_v47 = vpop.xlane.xlu0 %305 }
 0x146   : > { %859 = vlog2.f32 %v303_v55 }
 0x147   : > { %861 = vlog2.f32 %v306_v47 }
 0x149   : > { %v309_v25 = vpop.xlane.xlu1 %308  ;;  %v312_v56 = vpop.xlane.xlu0 %311 }
 0x14a   : > { %863 = vlog2.f32 %v309_v25 }
 0x14b   : > { %865 = vlog2.f32 %v312_v56 }
 0x14c   : > { %v858_v13 = vpop.eup %857 }
 0x14d   : > { %v315_v11 = vpop.xlane.xlu1 %314  ;;  %v318_v9 = vpop.xlane.xlu0 %317  ;;  %v347_v6 = vmul.f32 0.6931472, %v858_v13 }
 0x14e   : > { %867 = vlog2.f32 %v315_v11 }
 0x14f   : > { %869 = vlog2.f32 %v318_v9  ;;  %v378_v21 = vadd.f32 %v347_v6, %v1099_v59 }
 0x150   : > { %v860_v28 = vpop.eup %859 }
 0x151   : > { %v321_v18 = vpop.xlane.xlu1 %320  ;;  %v324_v1 = vpop.xlane.xlu0 %323  ;;  %v349_v2 = vmul.f32 0.6931472, %v860_v28 }
 0x152   : > { %871 = vlog2.f32 %v321_v18  ;;  %v862_v26 = vpop.eup %861 }
 0x153   : > { %873 = vlog2.f32 %v324_v1  ;;  %v351_v30 = vmul.f32 0.6931472, %v862_v26  ;;  %v1271_v9 = vadd.f32 %v349_v2, %v1107_v4  ;;  %v604_v1 = vmul.f32 8.0, %v378_v21 }
 0x154   : > { %v864_v17 = vpop.eup %863 }
 0x155   : > { %v327_v29 = vpop.xlane.xlu1 %326  ;;  %v330_v49 = vpop.xlane.xlu0 %329  ;;  %v353_v55 = vmul.f32 0.6931472, %v864_v17  ;;  %v380_v13 = vadd.f32 %v351_v30, %v1097_v58  ;;  %v620_v2 = vsub.f32 %v1172_v38, %v604_v1 }
 0x156   : > { %875 = vlog2.f32 %v330_v49  ;;  %v866_v16 = vpop.eup %865 }
 0x157   : > { %877 = vlog2.f32 %v327_v29  ;;  %v355_v18 = vmul.f32 0.6931472, %v866_v16  ;;  %v1275_v49 = vadd.f32 %v353_v55, %v1105_v0  ;;  %v605_v29 = vmul.f32 8.0, %v1271_v9 }
 0x158   : > { %v868_v47 = vpop.eup %867  ;;  %v606_v16 = vmul.f32 8.0, %v380_v13 }
 0x159   : > { %v333_v57 = vpop.xlane.xlu1 %332  ;;  %v336_v31 = vpop.xlane.xlu0 %335  ;;  %v357_v59 = vmul.f32 0.6931472, %v868_v47  ;;  %v1284_v58 = vadd.f32 %v355_v18, %v1115_v15  ;;  %v607_v0 = vmul.f32 8.0, %v1275_v49  ;;  %v621_v15 = vsub.f32 %v1169_v34, %v605_v29 }
 0x15a   : > { %v870_v11 = vpop.eup %869  ;;  %879 = vlog2.f32 %v333_v57  ;;  %v622_v18 = vsub.f32 %v1181_v19, %v606_v16 }
 0x15b   : > { %v359_v6 = vmul.f32 0.6931472, %v870_v11  ;;  %881 = vlog2.f32 %v336_v31  ;;  %v1293_v57 = vadd.f32 %v357_v59, %v1113_v12  ;;  %v636_v31 = vmul.f32 0.005, %v620_v2 }
 0x15c   : > { %v872_v28 = vpop.eup %871  ;;  %v623_v59 = vsub.f32 %v1175_v61, %v607_v0  ;;  %v638_v2 = vmul.f32 0.005, %v622_v18 }
 0x15d   : > { %v1259_v22 = vpop.xlane.xlu1 %338  ;;  %v342_v8 = vpop.xlane.xlu0 %341  ;;  %v361_v4 = vmul.f32 0.6931472, %v872_v28  ;;  %v1290_v45 = vadd.f32 %v359_v6, %v1123_v27  ;;  %v609_v19 = vmul.f32 8.0, %v1293_v57 }
 0x15e   : > { %v874_v54 = vpop.eup %873  ;;  %883 = vlog2.f32 %v342_v8  ;;  %v637_v8 = vmul.f32 0.005, %v621_v15 }
 0x15f   : > { %v363_v55 = vmul.f32 0.6931472, %v874_v54  ;;  %v608_v54 = vmul.f32 8.0, %v1284_v58  ;;  %v1301_v1 = vadd.f32 %v361_v4, %v1121_v24  ;;  %v610_v6 = vmul.f32 8.0, %v1290_v45 }
 0x160   : > { %v876_v30 = vpop.eup %875  ;;  %885 = vlog2.f32 %v1259_v22  ;;  %v625_v15 = vsub.f32 %v1179_v23, %v609_v19 }
 0x161   : > { %v1261_v10 = vpop.xlane.xlu1 %344  ;;  %v1263_v35 = vpop.xlane.xlu0 %425  ;;  %v367_v28 = vmul.f32 0.6931472, %v876_v30  ;;  %v1309_v29 = vadd.f32 %v363_v55, %v1131_v37  ;;  %v624_v16 = vsub.f32 %v1186_v60, %v608_v54  ;;  %v611_v0 = vmul.f32 8.0, %v1301_v1 }
 0x162   : > { %v878_v27 = vpop.eup %877  ;;  %887 = vlog2.f32 %v1261_v10  ;;  %v626_v60 = vsub.f32 %v1257_v14, %v610_v6 }
 0x163   : > { %v365_v61 = vmul.f32 0.6931472, %v878_v27  ;;  %v640_v23 = vmul.f32 0.005, %v624_v16  ;;  %v627_v14 = vsub.f32 %v1253_v20, %v611_v0 }
 0x164   : > { %v880_v30 = vpop.eup %879  ;;  %v642_v19 = vmul.f32 0.005, %v626_v60 }
 0x165   : > { %v1266_v25 = vpop.xlane.xlu1 %422  ;;  %v1268_v56 = vpop.xlane.xlu0 %431  ;;  %v369_v10 = vmul.f32 0.6931472, %v880_v30 }
 0x169   : > { %v1277_v26 = vpop.xlane.xlu1 %428  ;;  %v1279_v17 = vpop.xlane.xlu0 %437 }
 0x16d   : > { %v1287_v47 = vpop.xlane.xlu1 %434  ;;  %v526_v11 = vpop.xlane.xlu0 %525 }
 0x16e   : > { %v572_v38 = vsub.f32 %v526_v11, %v378_v21  ;;  %v1317_v11 = vadd.f32 %v367_v28, %v1141_v7  ;;  %v612_v7 = vmul.f32 8.0, %v1309_v29 }
 0x170   : > { %v588_v12 = vmul.f32 0.895, %v572_v38  ;;  %v614_v41 = vmul.f32 8.0, %v1317_v11 }
 0x171   : > { %v1304_v21 = vpop.xlane.xlu1 %440  ;;  %v532_v34 = vpop.xlane.xlu0 %531 }
 0x172   : > { %v652_v24 = vadd.f32 %v636_v31, %v588_v12  ;;  %v574_v4 = vsub.f32 %v532_v34, %v380_v13  ;;  %v639_v13 = vmul.f32 0.005, %v623_v59  ;;  %v882_v31 = vpop.eup %881  ;;  %v1335_v12 = vadd.f32 %v365_v61, %v1129_v36 }
 0x173   : > { %v628_v36 = vsub.f32 %v1255_v3, %v612_v7  ;;  %v884_v61 = vpop.eup %883  ;;  %v643_v3 = vmul.f32 0.005, %v627_v14  ;;  %v630_v40 = vsub.f32 %v1263_v35, %v614_v41 }
 0x174   : > { %v668_v37 = vsub.f32 0.0, %v652_v24  ;;  %v590_v22 = vmul.f32 0.895, %v574_v4  ;;  %v641_v4 = vmul.f32 0.005, %v625_v15  ;;  %v613_v30 = vmul.f32 8.0, %v1335_v12 }
 0x175   : > { %v529_v55 = vpop.xlane.xlu1 %528  ;;  %v538_v38 = vpop.xlane.xlu0 %537  ;;  %v375_v60 = vmul.f32 0.6931472, %v884_v61  ;;  %v646_v14 = vmul.f32 0.005, %v630_v40 }
 0x176   : > { %v700_v18 = vsel %vm684_vm0, %v668_v37, 0.0  ;;  %v654_v54 = vadd.f32 %v638_v2, %v590_v22  ;;  %v573_v27 = vsub.f32 %v529_v55, %v1271_v9  ;;  %v576_v28 = vsub.f32 %v538_v38, %v1284_v58  ;;  %v886_v55 = vpop.eup %885 }
 0x177   : > { %717 = vst.msk [vmem:[%s1323_s21] sm:$0xff] %vm716_vm3, %v700_v18  ;;  %v371_v58 = vmul.f32 0.6931472, %v882_v31  ;;  %v1349_v37 = vadd.f32 %v369_v10, %v1139_v5  ;;  %v644_v31 = vmul.f32 0.005, %v628_v36 }
 0x178   : > { %v670_v59 = vsub.f32 0.0, %v654_v54  ;;  %v589_v34 = vmul.f32 0.895, %v573_v27  ;;  %v592_v9 = vmul.f32 0.895, %v576_v28  ;;  %v888_v28 = vpop.eup %887 }
 0x179   : > { %v535_v6 = vpop.xlane.xlu1 %534  ;;  %v544_v24 = vpop.xlane.xlu0 %543  ;;  %v1357_v15 = vadd.f32 %v371_v58, %v1151_v33  ;;  %v373_v10 = vmul.f32 0.6931472, %v886_v55  ;;  %v629_v33 = vsub.f32 %v1266_v25, %v613_v30  ;;  %v615_v44 = vmul.f32 8.0, %v1349_v37 }
 0x17a   : > { %v702_v2 = vsel %vm686_vm2, %v670_v59, 0.0  ;;  %v653_v20 = vadd.f32 %v637_v8, %v589_v34  ;;  %v656_v16 = vadd.f32 %v640_v23, %v592_v9  ;;  %v575_v0 = vsub.f32 %v535_v6, %v1275_v49 }
 0x17b   : > { %719 = vst.msk [vmem:[%s1323_s21 + $0x10] sm:$0xff] %vm716_vm3, %v702_v2  ;;  %v578_v22 = vsub.f32 %v544_v24, %v1290_v45  ;;  %v392_v59 = vadd.f32 %v375_v60, %v1161_v63  ;;  %v377_v36 = vmul.f32 0.6931472, %v888_v28  ;;  %v1379_v61 = vadd.f32 %v373_v10, %v1149_v32 }
 0x17c   : > { %v669_v8 = vsub.f32 0.0, %v653_v20  ;;  %v672_v38 = vsub.f32 0.0, %v656_v16  ;;  %v591_v49 = vmul.f32 0.895, %v575_v0  ;;  %v645_v20 = vmul.f32 0.005, %v629_v33 }
 0x17d   : > { %v594_v5 = vmul.f32 0.895, %v578_v22  ;;  %v541_v7 = vpop.xlane.xlu1 %540  ;;  %v550_v18 = vpop.xlane.xlu0 %549  ;;  %v618_v32 = vmul.f32 8.0, %v392_v59  ;;  %v393_v60 = vadd.f32 %v377_v36, %v1159_v62 }
 0x17e   : > { %v701_v45 = vsel %vm685_vm4, %v669_v8, 0.0  ;;  %v704_v54 = vsel %vm688_vm5, %v672_v38, 0.0  ;;  %v655_v35 = vadd.f32 %v639_v13, %v591_v49  ;;  %v577_v27 = vsub.f32 %v541_v7, %v1293_v57 }
 0x17f   : > { %718 = vst.msk [vmem:[%s1323_s21 + $0x8] sm:$0xff] %vm716_vm3, %v701_v45  ;;  %721 = vst.msk [vmem:[%s1323_s21 + $0x20] sm:$0xff] %vm716_vm3, %v704_v54  ;;  %v658_v23 = vadd.f32 %v642_v19, %v594_v5  ;;  %v580_v39 = vsub.f32 %v550_v18, %v1309_v29  ;;  %v616_v57 = vmul.f32 8.0, %v1357_v15  ;;  %v631_v8 = vsub.f32 %v1277_v26, %v615_v44 }
 0x180   : > { %v671_v13 = vsub.f32 0.0, %v655_v35  ;;  %v593_v41 = vmul.f32 0.895, %v577_v27  ;;  %v617_v38 = vmul.f32 8.0, %v1379_v61  ;;  %v634_v5 = vsub.f32 %v1279_v17, %v618_v32 }
 0x181   : > { %v674_v34 = vsub.f32 0.0, %v658_v23  ;;  %v596_v25 = vmul.f32 0.895, %v580_v39  ;;  %v547_v9 = vpop.xlane.xlu1 %546  ;;  %v556_v58 = vpop.xlane.xlu0 %555  ;;  %v647_v54 = vmul.f32 0.005, %v631_v8  ;;  %v619_v50 = vmul.f32 8.0, %v393_v60 }
 0x182   : > { %v703_v6 = vsel %vm687_vm6, %v671_v13, 0.0  ;;  %v657_v19 = vadd.f32 %v641_v4, %v593_v41  ;;  %v579_v29 = vsub.f32 %v547_v9, %v1301_v1  ;;  %v582_v24 = vsub.f32 %v556_v58, %v1317_v11  ;;  %v1454_v13 = vld [vmem:[#allocation2_spill] sm:$0xff]  ;;  %v1455_v41 = vld [vmem:[#allocation5_spill] sm:$0xff] }
 0x183   : > { %720 = vst.msk [vmem:[%s1323_s21 + $0x18] sm:$0xff] %vm716_vm3, %v703_v6  ;;  %v706_v63 = vsel %vm690_vm7, %v674_v34, 0.0  ;;  %v660_v2 = vadd.f32 %v644_v31, %v596_v25  ;;  %v632_v11 = vsub.f32 %v1268_v56, %v616_v57  ;;  %v633_v27 = vsub.f32 %v1287_v47, %v617_v38 }
 0x184   : > { %723 = vst.msk [vmem:[%s1323_s21 + $0x30] sm:$0xff] %vm716_vm3, %v706_v63  ;;  %v673_v42 = vsub.f32 0.0, %v657_v19  ;;  %v595_v4 = vmul.f32 0.895, %v579_v29  ;;  %v598_v1 = vmul.f32 0.895, %v582_v24  ;;  %v635_v34 = vsub.f32 %v1304_v21, %v619_v50 }
 0x185   : > { %v676_v16 = vsub.f32 0.0, %v660_v2  ;;  %v553_v0 = vpop.xlane.xlu1 %552  ;;  %v562_v30 = vpop.xlane.xlu0 %561  ;;  %v648_v26 = vmul.f32 0.005, %v632_v11  ;;  %v650_v10 = vmul.f32 0.005, %v634_v5  ;;  %vm695_vm14 = vcmp.ne.s32.totalorder %v1454_v13, 255 }
 0x186   : > { %v705_v48 = vsel %vm689_vm8, %v673_v42, 0.0  ;;  %v659_v22 = vadd.f32 %v643_v3, %v595_v4  ;;  %v662_v55 = vadd.f32 %v646_v14, %v598_v1  ;;  %v581_v40 = vsub.f32 %v553_v0, %v1335_v12  ;;  %v1456_v24 = vld [vmem:[#allocation3_spill] sm:$0xff]  ;;  %v1457_v42 = vld [vmem:[#allocation4_spill] sm:$0xff] }
 0x187   : > { %722 = vst.msk [vmem:[%s1323_s21 + $0x28] sm:$0xff] %vm716_vm3, %v705_v48  ;;  %v708_v56 = vsel %vm692_vm9, %v676_v16, 0.0  ;;  %v584_v49 = vsub.f32 %v562_v30, %v1357_v15  ;;  %vm698_vm15 = vcmp.ne.s32.totalorder %v1455_v41, 255  ;;  %vm697_vm1 = vcmp.ne.s32.totalorder %v1456_v24, 255 }
 0x188   : > { %725 = vst.msk [vmem:[%s1323_s21 + $0x40] sm:$0xff] %vm716_vm3, %v708_v56  ;;  %v675_v46 = vsub.f32 0.0, %v659_v22  ;;  %v678_v3 = vsub.f32 0.0, %v662_v55  ;;  %v597_v12 = vmul.f32 0.895, %v581_v40  ;;  %vm699_vm0 = vcmp.ne.s32.totalorder %v1457_v42, 255 }
 0x189   : > { %v600_v7 = vmul.f32 0.895, %v584_v49  ;;  %v559_v31 = vpop.xlane.xlu1 %558  ;;  %v568_v51 = vpop.xlane.xlu0 %567  ;;  %v651_v36 = vmul.f32 0.005, %v635_v34 }
 0x18a   : > { %v707_v15 = vsel %vm691_vm10, %v675_v46, 0.0  ;;  %v710_v62 = vsel %vm694_vm11, %v678_v3, 0.0  ;;  %v661_v18 = vadd.f32 %v645_v20, %v597_v12  ;;  %v583_v45 = vsub.f32 %v559_v31, %v1349_v37 }
 0x18b   : > { %724 = vst.msk [vmem:[%s1323_s21 + $0x38] sm:$0xff] %vm716_vm3, %v707_v15  ;;  %727 = vst.msk [vmem:[%s1323_s21 + $0x50] sm:$0xff] %vm716_vm3, %v710_v62  ;;  %v664_v17 = vadd.f32 %v648_v26, %v600_v7  ;;  %v586_v35 = vsub.f32 %v568_v51, %v392_v59  ;;  %v649_v59 = vmul.f32 0.005, %v633_v27 }
 0x18c   : > { %v677_v28 = vsub.f32 0.0, %v661_v18  ;;  %v599_v52 = vmul.f32 0.895, %v583_v45 }
 0x18d   : > { %v680_v33 = vsub.f32 0.0, %v664_v17  ;;  %v602_v23 = vmul.f32 0.895, %v586_v35  ;;  %v565_v37 = vpop.xlane.xlu1 %564 }
 0x18e   : > { %v709_v39 = vsel %vm693_vm12, %v677_v28, 0.0  ;;  %v663_v14 = vadd.f32 %v647_v54, %v599_v52  ;;  %v585_v44 = vsub.f32 %v565_v37, %v1379_v61 }
 0x18f   : > { %726 = vst.msk [vmem:[%s1323_s21 + $0x48] sm:$0xff] %vm716_vm3, %v709_v39  ;;  %v712_v47 = vsel %vm696_vm13, %v680_v33, 0.0  ;;  %v666_v57 = vadd.f32 %v650_v10, %v602_v23 }
 0x190   : > { %729 = vst.msk [vmem:[%s1323_s21 + $0x60] sm:$0xff] %vm716_vm3, %v712_v47  ;;  %v679_v43 = vsub.f32 0.0, %v663_v14  ;;  %v601_v25 = vmul.f32 0.895, %v585_v44 }
 0x191   : > { %v682_v9 = vsub.f32 0.0, %v666_v57  ;;  %v571_v58 = vpop.xlane.xlu1 %570 }
 0x192   : > { %v711_v6 = vsel %vm695_vm14, %v679_v43, 0.0  ;;  %v665_v19 = vadd.f32 %v649_v59, %v601_v25  ;;  %v587_v29 = vsub.f32 %v571_v58, %v393_v60 }
 0x193   : > { %728 = vst.msk [vmem:[%s1323_s21 + $0x58] sm:$0xff] %vm716_vm3, %v711_v6  ;;  %v714_v53 = vsel %vm698_vm15, %v682_v9, 0.0 }
 0x194   : > { %731 = vst.msk [vmem:[%s1323_s21 + $0x70] sm:$0xff] %vm716_vm3, %v714_v53  ;;  %v681_v21 = vsub.f32 0.0, %v665_v19  ;;  %v603_v61 = vmul.f32 0.895, %v587_v29 }
 0x196   : > { %v713_v63 = vsel %vm697_vm1, %v681_v21, 0.0  ;;  %v667_v2 = vadd.f32 %v651_v36, %v603_v61 }
 0x197   : > { %730 = vst.msk [vmem:[%s1323_s21 + $0x68] sm:$0xff] %vm716_vm3, %v713_v63 }
 0x198   : > { %v683_v4 = vsub.f32 0.0, %v667_v2 }
 0x19a   : > { %v715_v1 = vsel %vm699_vm0, %v683_v4, 0.0 }
 0x19b   : > { %732 = vst.msk [vmem:[%s1323_s21 + $0x78] sm:$0xff] %vm716_vm3, %v715_v1 }
 0x19c PF: > { %s12_s9 = sadd.s32 1, %s895_s9  }
 0x19d   : > { %p9_p4 = scmp.ge.s32.totalorder %s12_s9, 6  }
 0x19f   :  { %11 = sbr.rel (!%p9_p4) target bundleno = 1 (0x1), region = 61 }

</bundles_post_ra>
